<compile_context>
chip_gen: v7x
topology: tpu7x:2x2x1
jax: 0.10.0
libtpu: 0.0.40
codegen_flags: <defaults>
</compile_context>

<pallas_src>
import functools

import jax
import jax.numpy as jnp
from jax import lax
from jax.experimental import pallas as pl
from jax.experimental.pallas import tpu as pltpu  # noqa: F401  (TPU backend)


def _fused_attn_kernel(x_ref,      # (B*Lq + 2*B*Lk, D)  stacked [q; k; v] rows
                       w_ref,      # (D, 3H)   [Wq^T | Wk^T | Wv^T]
                       b_ref,      # (1, 3H)   [bq | bk | bv]
                       bits_ref,   # (B*Lq, Lk) uint32 dropout bits
                       o_ref,      # (B*Lq, H)
                       *, B, Lq, Lk, H, scale, inv_keep, keep_threshold):
    x = x_ref[...]                                        # (N, D)

    # One fused projection for all of q/k/v across the whole batch:
    # (N, D) @ (D, 3H) + (1, 3H)  ->  (N, 3H)
    proj = jnp.dot(x, w_ref[...], preferred_element_type=jnp.float32) + b_ref[...]

    n_q = B * Lq
    n_k = B * Lk
    queries = proj[:n_q, 0:H]                             # (B*Lq, H)
    keys    = proj[n_q:n_q + n_k, H:2 * H]                # (B*Lk, H)
    values  = proj[n_q + n_k:, 2 * H:3 * H]               # (B*Lk, H)

    thresh = jnp.uint32(keep_threshold)

    # B is tiny and static -> fully unrolled; all slices are static.
    for b in range(B):
        qb = queries[b * Lq:(b + 1) * Lq, :]              # (Lq, H)
        kb = keys[b * Lk:(b + 1) * Lk, :]                 # (Lk, H)
        vb = values[b * Lk:(b + 1) * Lk, :]               # (Lk, H)

        # scores: contract the head dim  ->  (Lq, Lk)
        s = lax.dot_general(qb, kb, (((1,), (1,)), ((), ())),
                            preferred_element_type=jnp.float32) * scale

        # softmax along last dim, with the dropout 1/keep_prob rescale folded
        # into the normalisation multiply.
        m = jnp.max(s, axis=-1, keepdims=True)
        e = jnp.exp(s - m)
        denom = jnp.sum(e, axis=-1, keepdims=True)
        p = e * ((1.0 / denom) * inv_keep)                # softmax * (1/keep)

        # dropout keep-test: single integer compare of pre-drawn bits.
        keep = bits_ref[b * Lq:(b + 1) * Lq, :] < thresh
        dropped = jnp.where(keep, p, 0.0)

        # output = dropped @ values  ->  (Lq, H); dense 2-D slab store.
        o_ref[b * Lq:(b + 1) * Lq, :] = jnp.dot(
            dropped, vb, preferred_element_type=jnp.float32)


def model_forward(q, k, v, params, num_heads, *, key, p_drop=0.9):
    B, Lq, D = q.shape
    _, Lk, _ = k.shape
    H = num_heads

    # exact PyTorch formula: (num_heads // qk.size(-1)) ** (-0.25)
    scale = float((num_heads // Lk) ** (-0.25))
    keep_prob = 1.0 - p_drop

    # Fused, pre-transposed weights / biases: (D, 3H) and (1, 3H).
    w = jnp.concatenate(
        [params["wq"].T, params["wk"].T, params["wv"].T], axis=1)
    bias = jnp.concatenate(
        [params["bq"], params["bk"], params["bv"]]).reshape(1, 3 * H)

    # Stacked activations: [q; k; v] flattened over batch -> (B*Lq + 2*B*Lk, D)
    x2d = jnp.concatenate([q.reshape(B * Lq, D),
                           k.reshape(B * Lk, D),
                           v.reshape(B * Lk, D)], axis=0)

    # TODO(synk): dropout randomness is drawn host-side with jax.random (the
    # in-kernel stateful TPU PRNG has no CPU/interpret lowering); the stream is
    # not bit-identical to torch.nn.functional.dropout, only equal in law.
    bits = jax.random.bits(key, (B * Lq, Lk), dtype=jnp.uint32)
    keep_threshold = min(int(round(keep_prob * 2 ** 32)), 2 ** 32 - 1)

    kernel = functools.partial(
        _fused_attn_kernel, B=B, Lq=Lq, Lk=Lk, H=H,
        scale=scale, inv_keep=1.0 / keep_prob, keep_threshold=keep_threshold)

    out2d = pl.pallas_call(
        kernel,
        out_shape=jax.ShapeDtypeStruct((B * Lq, H), jnp.float32),
    )(x2d, w, bias, bits)
    return out2d.reshape(B, Lq, H)


def init_params(key, num_heads, in_features=4):
    # Deterministic nn.Linear-style init: U(-1/sqrt(in), 1/sqrt(in)).
    bound = 1.0 / (in_features ** 0.5)
    ks = jax.random.split(key, 6)
    u = lambda kk, shape: jax.random.uniform(
        kk, shape, jnp.float32, minval=-bound, maxval=bound)
    return {
        "wq": u(ks[0], (num_heads, in_features)), "bq": u(ks[1], (num_heads,)),
        "wk": u(ks[2], (num_heads, in_features)), "bk": u(ks[3], (num_heads,)),
        "wv": u(ks[4], (num_heads, in_features)), "bv": u(ks[5], (num_heads,)),
    }


def _reference(q, k, v, params, num_heads, bits, keep_threshold, keep_prob):
    # Pure-JAX reference with the same dropout mask, for a sanity check.
    B, Lq, _ = q.shape
    Lk = k.shape[1]
    scale = float((num_heads // Lk) ** (-0.25))
    queries = q @ params["wq"].T + params["bq"]
    keys = k @ params["wk"].T + params["bk"]
    values = v @ params["wv"].T + params["bv"]
    qk = jnp.einsum("bqh,bkh->bqk", queries, keys) * scale
    sm = jax.nn.softmax(qk, axis=-1)
    keep = bits.reshape(B, Lq, Lk) < jnp.uint32(keep_threshold)
    dropped = jnp.where(keep, sm / keep_prob, 0.0)
    return jnp.einsum("bqk,bkh->bqh", dropped, values)


if __name__ == "__main__":
    # Small shapes consistent with the module: Linear in_features = 4.
    B, Lq, Lk, D = 2, 8, 4, 4
    num_heads = 8   # chosen so (num_heads // Lk) ** -0.25 is well defined

    key = jax.random.PRNGKey(0)
    kq, kk, kv, kp, kd = jax.random.split(key, 5)
    q = jax.random.normal(kq, (B, Lq, D), dtype=jnp.float32)
    k = jax.random.normal(kk, (B, Lk, D), dtype=jnp.float32)
    v = jax.random.normal(kv, (B, Lk, D), dtype=jnp.float32)
    params = init_params(kp, num_heads, D)

    out = model_forward(q, k, v, params, num_heads, key=kd)
    jax.block_until_ready(out)
    assert out.shape == (B, Lq, num_heads)

    # Sanity check against a pure-JAX reference using the same dropout bits.
    keep_prob = 0.1
    keep_threshold = min(int(round(keep_prob * 2 ** 32)), 2 ** 32 - 1)
    bits = jax.random.bits(kd, (B * Lq, Lk), dtype=jnp.uint32)
    ref = _reference(q, k, v, params, num_heads, bits, keep_threshold, keep_prob)
    assert jnp.allclose(out, ref, rtol=1e-3, atol=1e-3), "mismatch vs reference"

    print("KERNEL_OK")
</pallas_src>

<mosaic_0001>
module attributes {stable_mosaic.version = 11 : i64} {
  func.func @_fused_attn_kernel(%arg0: memref<32x4xf32, #tpu.memory_space<vmem>>, %arg1: memref<4x24xf32, #tpu.memory_space<vmem>>, %arg2: memref<1x24xf32, #tpu.memory_space<vmem>>, %arg3: memref<16x4xi32, #tpu.memory_space<vmem>>, %arg4: memref<16x8xf32, #tpu.memory_space<vmem>>) attributes {dimension_semantics = [], scalar_prefetch = 0 : i64, scratch_operands = 0 : i64, tpu.core_type = #tpu.core_type<tc>} {
    %c0 = arith.constant 0 : index
    %c0_0 = arith.constant 0 : index
    %0 = vector.load %arg0[%c0, %c0_0] : memref<32x4xf32, #tpu.memory_space<vmem>>, vector<32x4xf32>
    %c0_1 = arith.constant 0 : index
    %c0_2 = arith.constant 0 : index
    %1 = vector.load %arg1[%c0_1, %c0_2] : memref<4x24xf32, #tpu.memory_space<vmem>>, vector<4x24xf32>
    %cst = arith.constant dense<0.000000e+00> : vector<32x24xf32>
    %2 = tpu.matmul %0, %1, %cst {dimension_numbers = #tpu.dot_dimension_numbers<[1], [0], [0], [1], [0, 0, 1, 1], [], []>} : vector<32x4xf32>, vector<4x24xf32>, vector<32x24xf32> -> vector<32x24xf32>
    %c0_3 = arith.constant 0 : index
    %c0_4 = arith.constant 0 : index
    %3 = vector.load %arg2[%c0_3, %c0_4] : memref<1x24xf32, #tpu.memory_space<vmem>>, vector<1x24xf32>
    %4 = vector.broadcast %3 : vector<1x24xf32> to vector<32x24xf32>
    %5 = arith.addf %2, %4 : vector<32x24xf32>
    %6 = vector.extract_strided_slice %5 {offsets = [0, 0], sizes = [16, 8], strides = [1, 1]} : vector<32x24xf32> to vector<16x8xf32>
    %7 = vector.extract_strided_slice %5 {offsets = [16, 8], sizes = [8, 8], strides = [1, 1]} : vector<32x24xf32> to vector<8x8xf32>
    %8 = vector.extract_strided_slice %5 {offsets = [24, 16], sizes = [8, 8], strides = [1, 1]} : vector<32x24xf32> to vector<8x8xf32>
    %9 = vector.extract_strided_slice %6 {offsets = [0, 0], sizes = [8, 8], strides = [1, 1]} : vector<16x8xf32> to vector<8x8xf32>
    %10 = vector.extract_strided_slice %7 {offsets = [0, 0], sizes = [4, 8], strides = [1, 1]} : vector<8x8xf32> to vector<4x8xf32>
    %11 = vector.extract_strided_slice %8 {offsets = [0, 0], sizes = [4, 8], strides = [1, 1]} : vector<8x8xf32> to vector<4x8xf32>
    %cst_5 = arith.constant dense<0.000000e+00> : vector<8x4xf32>
    %12 = tpu.matmul %9, %10, %cst_5 {dimension_numbers = #tpu.dot_dimension_numbers<[1], [1], [0], [0], [0, 0, 1, 0], [], []>} : vector<8x8xf32>, vector<4x8xf32>, vector<8x4xf32> -> vector<8x4xf32>
    %cst_6 = arith.constant 0.840896427 : f32
    %13 = vector.broadcast %cst_6 : f32 to vector<8x4xf32>
    %14 = arith.mulf %12, %13 : vector<8x4xf32>
    %cst_7 = arith.constant dense<0xFF800000> : vector<8xf32>
    %15 = vector.multi_reduction <maximumf>, %14, %cst_7 [1] : vector<8x4xf32> to vector<8xf32>
    %16 = vector.shape_cast %15 : vector<8xf32> to vector<8x1xf32>
    %17 = vector.broadcast %16 : vector<8x1xf32> to vector<8x4xf32>
    %18 = arith.subf %14, %17 : vector<8x4xf32>
    %19 = math.exp %18 : vector<8x4xf32>
    %cst_8 = arith.constant dense<0.000000e+00> : vector<8xf32>
    %20 = vector.multi_reduction <add>, %19, %cst_8 [1] : vector<8x4xf32> to vector<8xf32>
    %21 = vector.shape_cast %20 : vector<8xf32> to vector<8x1xf32>
    %cst_9 = arith.constant 1.000000e+00 : f32
    %22 = vector.broadcast %cst_9 : f32 to vector<8x1xf32>
    %23 = arith.divf %22, %21 : vector<8x1xf32>
    %cst_10 = arith.constant 1.000000e+01 : f32
    %24 = vector.broadcast %cst_10 : f32 to vector<8x1xf32>
    %25 = arith.mulf %23, %24 : vector<8x1xf32>
    %26 = vector.broadcast %25 : vector<8x1xf32> to vector<8x4xf32>
    %27 = arith.mulf %19, %26 : vector<8x4xf32>
    %c0_11 = arith.constant 0 : index
    %c0_12 = arith.constant 0 : index
    %28 = vector.load %arg3[%c0_11, %c0_12] : memref<16x4xi32, #tpu.memory_space<vmem>>, vector<8x4xi32>
    %c429496730_i32 = arith.constant 429496730 : i32
    %29 = vector.broadcast %c429496730_i32 : i32 to vector<8x4xi32>
    %30 = arith.cmpi ult, %28, %29 : vector<8x4xi32>
    %cst_13 = arith.constant 0.000000e+00 : f32
    %31 = vector.broadcast %cst_13 : f32 to vector<8x4xf32>
    %32 = arith.select %30, %27, %31 : vector<8x4xi1>, vector<8x4xf32>
    %cst_14 = arith.constant dense<0.000000e+00> : vector<8x8xf32>
    %33 = tpu.matmul %32, %11, %cst_14 {dimension_numbers = #tpu.dot_dimension_numbers<[1], [0], [0], [1], [0, 0, 1, 1], [], []>} : vector<8x4xf32>, vector<4x8xf32>, vector<8x8xf32> -> vector<8x8xf32>
    %c0_15 = arith.constant 0 : index
    %c0_16 = arith.constant 0 : index
    %34 = vector.load %arg4[%c0_15, %c0_16] : memref<16x8xf32, #tpu.memory_space<vmem>>, vector<8x8xf32>
    tpu.vector_store %arg4[%c0_15, %c0_16], %33 {strides = array<i32>} : memref<16x8xf32, #tpu.memory_space<vmem>>, vector<8x8xf32>,
    %35 = vector.extract_strided_slice %6 {offsets = [8, 0], sizes = [8, 8], strides = [1, 1]} : vector<16x8xf32> to vector<8x8xf32>
    %36 = vector.extract_strided_slice %7 {offsets = [4, 0], sizes = [4, 8], strides = [1, 1]} : vector<8x8xf32> to vector<4x8xf32>
    %37 = vector.extract_strided_slice %8 {offsets = [4, 0], sizes = [4, 8], strides = [1, 1]} : vector<8x8xf32> to vector<4x8xf32>
    %cst_17 = arith.constant dense<0.000000e+00> : vector<8x4xf32>
    %38 = tpu.matmul %35, %36, %cst_17 {dimension_numbers = #tpu.dot_dimension_numbers<[1], [1], [0], [0], [0, 0, 1, 0], [], []>} : vector<8x8xf32>, vector<4x8xf32>, vector<8x4xf32> -> vector<8x4xf32>
    %cst_18 = arith.constant 0.840896427 : f32
    %39 = vector.broadcast %cst_18 : f32 to vector<8x4xf32>
    %40 = arith.mulf %38, %39 : vector<8x4xf32>
    %cst_19 = arith.constant dense<0xFF800000> : vector<8xf32>
    %41 = vector.multi_reduction <maximumf>, %40, %cst_19 [1] : vector<8x4xf32> to vector<8xf32>
    %42 = vector.shape_cast %41 : vector<8xf32> to vector<8x1xf32>
    %43 = vector.broadcast %42 : vector<8x1xf32> to vector<8x4xf32>
    %44 = arith.subf %40, %43 : vector<8x4xf32>
    %45 = math.exp %44 : vector<8x4xf32>
    %cst_20 = arith.constant dense<0.000000e+00> : vector<8xf32>
    %46 = vector.multi_reduction <add>, %45, %cst_20 [1] : vector<8x4xf32> to vector<8xf32>
    %47 = vector.shape_cast %46 : vector<8xf32> to vector<8x1xf32>
    %cst_21 = arith.constant 1.000000e+00 : f32
    %48 = vector.broadcast %cst_21 : f32 to vector<8x1xf32>
    %49 = arith.divf %48, %47 : vector<8x1xf32>
    %cst_22 = arith.constant 1.000000e+01 : f32
    %50 = vector.broadcast %cst_22 : f32 to vector<8x1xf32>
    %51 = arith.mulf %49, %50 : vector<8x1xf32>
    %52 = vector.broadcast %51 : vector<8x1xf32> to vector<8x4xf32>
    %53 = arith.mulf %45, %52 : vector<8x4xf32>
    %c8 = arith.constant 8 : index
    %c0_23 = arith.constant 0 : index
    %54 = vector.load %arg3[%c8, %c0_23] : memref<16x4xi32, #tpu.memory_space<vmem>>, vector<8x4xi32>
    %c429496730_i32_24 = arith.constant 429496730 : i32
    %55 = vector.broadcast %c429496730_i32_24 : i32 to vector<8x4xi32>
    %56 = arith.cmpi ult, %54, %55 : vector<8x4xi32>
    %cst_25 = arith.constant 0.000000e+00 : f32
    %57 = vector.broadcast %cst_25 : f32 to vector<8x4xf32>
    %58 = arith.select %56, %53, %57 : vector<8x4xi1>, vector<8x4xf32>
    %cst_26 = arith.constant dense<0.000000e+00> : vector<8x8xf32>
    %59 = tpu.matmul %58, %37, %cst_26 {dimension_numbers = #tpu.dot_dimension_numbers<[1], [0], [0], [1], [0, 0, 1, 1], [], []>} : vector<8x4xf32>, vector<4x8xf32>, vector<8x8xf32> -> vector<8x8xf32>
    %c8_27 = arith.constant 8 : index
    %c0_28 = arith.constant 0 : index
    %60 = vector.load %arg4[%c8_27, %c0_28] : memref<16x8xf32, #tpu.memory_space<vmem>>, vector<8x8xf32>
    tpu.vector_store %arg4[%c8_27, %c0_28], %59 {strides = array<i32>} : memref<16x8xf32, #tpu.memory_space<vmem>>, vector<8x8xf32>,
    return
  }
}

</mosaic_0001>

<bundles_post_ra>
// kernel: tpu_custom_call.1
= control target key start
LH: loop header
LB: loop body
LE: loop exit
PB: predicated region body
PF: predicated region fallthrough
CT: control target
= control target key end

     0   :  { %vm42_vm0 = vcmask 1043456   ;;  %vm29_vm1 = vcmask 31744   ;;  %v551_v5 = vmov 0.0   ;;  %vm552_vm2 = vmmov 0   ;;  %s642_s1 = inlined_call_operand.vmem [shape: f32[4,24], index: 1, kind: input, shape index: {}]   ;;  %s643_s0 = inlined_call_operand.vmem [shape: f32[32,4], index: 0, kind: input, shape index: {}]   ;;  %s644_s2 = inlined_call_operand.vmem [shape: f32[1,24], index: 2, kind: input, shape index: {}]   ;;  %s645_s3 = inlined_call_operand.vmem [shape: u32[16,4], index: 3, kind: input, shape index: {}]   ;;  %s646_s4 = inlined_call_operand.vmem [shape: f32[16,8], index: 4, kind: output, shape index: {}]  }
   0x1   :  { %v21_v0 = vld [vmem:[%s642_s1] sm:$0xf]  ;;  %v18_v2 = vld [vmem:[%s643_s0 + $0x8] sm:$0xff]  ;;  %v19_v3 = vld [vmem:[%s643_s0 + $0x10] sm:$0xff]  ;;  %519 = vmatprep.subr.mxu1 %v551_v5  ;;  %521 = vmatprep.mubr.msk.f32.mxu1 %vm552_vm2, %v551_v5  ;;  %vm134_vm3 = vcmask 64512  }
   0x2   :  { %v17_v1 = vld [vmem:[%s643_s0] sm:$0xff]  ;;  %511 = vmatprep.subr.msk.mxu0 %vm42_vm0, %v21_v0  ;;  %v20_v4 = vld [vmem:[%s643_s0 + $0x18] sm:$0xff]  ;;  %s553_s0 = smov 120   ;;  %v398_v44 = vld [vmem:[%s645_s3 + $0x8] sm:$0xff] }
   0x3   :  { %513 = vmatprep.mubr.msk.f32.mxu0 %vm29_vm1, %v17_v1  ;;  %512 = vmatpush3.msk.msra.mxu0 %vm42_vm0, %v21_v0  ;;  %v484_v6 = vld [vmem:[%s644_s2] ss:$0 sm:$0xff]  ;;  %s554_s2 = smov 112   ;;  %vm399_vm5 = vcmp.lt.u32.totalorder %v398_v44, 429496730 }
   0x4   :  { %514 = vmatmul.mubr.msk.f32.vlgmr.msra.gmra.mrb[0].mxu0 %vm29_vm1, %v18_v2  ;;  %529 = vmatprep.subr.mxu0 %v551_v5  ;;  %v224_v40 = vld [vmem:[%s645_s3] sm:$0xff] }
   0x5   :  { %516 = vmatprep.mubr.msk.f32.mxu0 %vm29_vm1, %v19_v3  ;;  %vm225_vm4 = vcmp.lt.u32.totalorder %v224_v40, 429496730 }
   0x8   :  { %517 = vmatmul.mubr.msk.f32.gmra.mrb[2].mxu0 %vm29_vm1, %v20_v4 }
   0x9   :  { %531 = vmatprep.mubr.msk.f32.mxu0 %vm552_vm2, %v551_v5 }
  0xd7   :  { %v515_v7 = vpop.f32.mrb[0].mxu0 }
  0xd8   :  { %v118_v8 = vadd.f32 %v515_v7, %v484_v6  ;;  %v112_v9 = vpop.f32.mrb[1].mxu0 }
  0xd9   :  { %v113_v10 = vadd.f32 %v484_v6, %v112_v9 }
  0xdb   :  { %v518_v11 = vpop.f32.mrb[2].mxu0 }
  0xdc   :  { %v128_v12 = vadd.f32 %v518_v11, %v484_v6  ;;  %v122_v13 = vpop.f32.mrb[3].mxu0 }
  0xdd   :  { %v123_v14 = vadd.f32 %v484_v6, %v122_v13 }
  0xde   :  { %v401_v37 = vrot.slane %v128_v12, 4 }
  0xdf   :  { %132 = vrot.lane.b32.xlu0 %v123_v14, %s553_s0  ;;  %v306_v15 = vrot.slane %v123_v14, 4 }
  0xe3   :  { %307 = vrot.lane.b32.xlu0 %v306_v15, %s553_s0 }
 0x151   :  { %v133_v16 = vpop.permute.xlu0 %132 }
 0x152   :  { %520 = vmatpush3.xpose.msk.msra.mxu1 %vm134_vm3, %v133_v16 }
 0x153   :  { %524 = vmatprep.subr.mxu1 %v551_v5 }
 0x155   :  { %v308_v17 = vpop.permute.xlu0 %307  ;;  %522 = vmatmul.mubr.msk.f32.vlgmr.msra.gmra.mrb[0].mxu1 %vm134_vm3, %v113_v10 }
 0x156   :  { %530 = vmatpush3.xpose.msk.msra.mxu0 %vm134_vm3, %v308_v17  ;;  %526 = vmatprep.mubr.msk.f32.mxu1 %vm552_vm2, %v551_v5 }
 0x159   :  { %532 = vmatmul.mubr.msk.f32.vlgmr.msra.gmra.mrb[4].mxu0 %vm134_vm3, %v118_v8 }
 0x228   :  { %v206_v18 = vpop.f32.mrb[0].mxu1 }
 0x229   :  { %v210_v19 = vmul.f32 0.8408964, %v206_v18  ;;  %v523_v20 = vpop.f32.mrb[1].mxu1 }
 0x22b   :  { %v211_v21 = vsel %vm29_vm1, %v210_v19, -inf }
 0x22c   :  { %v380_v22 = vpop.f32.mrb[4].mxu0  ;;  %212 = vmax.xlane.f32.xlu1 %v211_v21 }
 0x22d   :  { %v384_v23 = vmul.f32 0.8408964, %v380_v22  ;;  %v533_v24 = vpop.f32.mrb[5].mxu0 }
 0x22f   :  { %v385_v25 = vsel %vm29_vm1, %v384_v23, -inf }
 0x230   :  { %386 = vmax.xlane.f32.xlu1 %v385_v25 }
 0x241   :  { %228 = vrot.lane.b32.xlu1 %v128_v12, %s554_s2 }
 0x2b9   :  { %v213_v26 = vpop.xlane.xlu1 %212 }
 0x2ba   :  { %v214_v27 = vsub.f32 %v210_v19, %v213_v26 }
 0x2bc   :  { %v215_v28 = vmul.f32 1.442695, %v214_v27 }
 0x2bd   :  { %v387_v29 = vpop.xlane.xlu1 %386 }
 0x2be   :  { %543 = vpow2.f32 %v215_v28  ;;  %v388_v30 = vsub.f32 %v384_v23, %v387_v29 }
 0x2c0   :  { %v389_v31 = vmul.f32 1.442695, %v388_v30 }
 0x2c1   :  { %v229_v32 = vpop.permute.xlu1 %228 }
 0x2c2   :  { %545 = vpow2.f32 %v389_v31  ;;  %525 = vmatpush3.msk.msra.mxu1 %vm42_vm0, %v229_v32 }
 0x2c3   :  { %534 = vmatprep.subr.mxu1 %v551_v5 }
 0x2c8   :  { %v544_v33 = vpop.eup %543 }
 0x2c9   :  { %v217_v34 = vsel %vm29_vm1, %v544_v33, 0.0 }
 0x2ca   :  { %218 = vadd.xlane.f32.xlu0 %v217_v34 }
 0x2cc   :  { %v546_v35 = vpop.eup %545 }
 0x2cd   :  { %v391_v36 = vsel %vm29_vm1, %v546_v35, 0.0 }
 0x2ce   :  { %392 = vadd.xlane.f32.xlu1 %v391_v36 }
 0x2df   :  { %402 = vrot.lane.b32.xlu1 %v401_v37, %s554_s2 }
 0x357   :  { %v219_v38 = vpop.xlane.xlu0 %218 }
 0x358   :  { %547 = vrcp.f32 %v219_v38 }
 0x35b   :  { %v393_v39 = vpop.xlane.xlu1 %392 }
 0x35c   :  { %549 = vrcp.f32 %v393_v39 }
 0x35f   :  { %v403_v48 = vpop.permute.xlu1 %402 }
 0x362   :  { %v548_v41 = vpop.eup %547 }
 0x363   :  { %v222_v42 = vmul.f32 10.0, %v548_v41 }
 0x365   :  { %v223_v43 = vmul.f32 %v544_v33, %v222_v42 }
 0x366   :  { %v550_v45 = vpop.eup %549 }
 0x367   :  { %v396_v46 = vmul.f32 10.0, %v550_v45  ;;  %v226_v47 = vsel %vm225_vm4, %v223_v43, 0.0 }
 0x368   :  { %527 = vmatmul.mubr.msk.f32.vlgmr.msra.gmra.mrb[2].mxu1 %vm29_vm1, %v226_v47 }
 0x369   :  { %v397_v49 = vmul.f32 %v546_v35, %v396_v46  ;;  %535 = vmatpush3.msk.msra.mxu1 %vm42_vm0, %v403_v48  ;;  %536 = vmatprep.mubr.msk.f32.mxu1 %vm552_vm2, %v551_v5 }
 0x36b   :  { %v400_v50 = vsel %vm399_vm5, %v397_v49, 0.0 }
 0x36c   :  { %537 = vmatmul.mubr.msk.f32.vlgmr.msra.gmra.mrb[4].mxu1 %vm29_vm1, %v400_v50 }
 0x43b   :  { %v301_v51 = vpop.f32.mrb[2].mxu1 }
 0x43c   :  { %305 = vst.msk [vmem:[%s646_s4] sm:$0xff] %vm134_vm3, %v301_v51  ;;  %v528_v52 = vpop.f32.mrb[3].mxu1 }
 0x43f   :  { %v475_v53 = vpop.f32.mrb[4].mxu1 }
 0x440   :  { %479 = vst.msk [vmem:[%s646_s4 + $0x8] sm:$0xff] %vm134_vm3, %v475_v53  ;;  %v538_v54 = vpop.f32.mrb[5].mxu1 }

</bundles_post_ra>
